<compile_context>
chip_gen: v7x
topology: tpu7x:2x2x1
jax: 0.10.0
libtpu: 0.0.40
codegen_flags: <defaults>
</compile_context>

<pallas_src>
import jax
import jax.numpy as jnp
import numpy as np
from jax.experimental import pallas as pl
from jax.experimental.pallas import tpu as pltpu


# -----------------------------------------------------------------------------
# Pallas kernel: one grid step == (modality, batch element).
# -----------------------------------------------------------------------------
def _nonlocal_kernel(x_ref, xp_ref, prior_t_ref,
                     wth_ref, bth_ref, wpool_ref, bpool_ref,
                     ww_ref, bw_ref, out_ref):
    f32 = jnp.float32
    bf16 = jnp.bfloat16

    x = x_ref[0, 0]                     # (C, HW)   f32 tokens (residual stays f32)
    xp = xp_ref[0, 0]                   # (C, HWp)  bf16 2x2 max-pooled tokens
    x_bf = x.astype(bf16)

    ic = wth_ref.shape[1]               # inter_channels (static)

    # theta 1x1 conv on full-res tokens: (ic, C) @ (C, HW) -> (ic, HW).
    theta = jnp.dot(wth_ref[0], x_bf, preferred_element_type=f32) + bth_ref[0]

    # phi / g 1x1 convs fused into ONE matmul on the pooled tokens.
    # wpool = [w_phi; w_g; zeros], bpool = [b_phi; b_g; 1] -> last row of the
    # result is an exact ones row (becomes the softmax denominator below).
    pool = jnp.dot(wpool_ref[0], xp, preferred_element_type=f32) + bpool_ref[0]  # (2ic+1, HWp)
    phi = pool[:ic]                     # (ic, HWp)
    g_aug = pool[ic:]                   # (ic+1, HWp), last row == 1.0

    # Transposed attention logits (lane-dense on HW): attT[k, q] = theta·phi.
    att_t = jax.lax.dot_general(
        phi.astype(bf16), theta.astype(bf16),
        dimension_numbers=(((0,), (0,)), ((), ())),
        preferred_element_type=f32)                                    # (HWp, HW)
    att_t = att_t + prior_t_ref[...]
    att_t = att_t - jnp.max(att_t, axis=0, keepdims=True)
    p_t = jnp.exp(att_t).astype(bf16)                                  # (HWp, HW)

    # Value aggregation; the augmented ones row yields the softmax denominator
    # from the same contraction (no separate M=1 matmul).
    y_aug = jax.lax.dot_general(
        g_aug.astype(bf16), p_t,
        dimension_numbers=(((1,), (0,)), ((), ())),
        preferred_element_type=f32)                                    # (ic+1, HW)
    denom = y_aug[ic:ic + 1, :]                                        # (1, HW)
    y = y_aug[:ic, :] * pl.reciprocal(denom, approx=True)              # (ic, HW)

    # W 1x1 conv (eval-mode BatchNorm + bias folded in), + f32 residual.
    z = jnp.dot(ww_ref[0], y.astype(bf16), preferred_element_type=f32) + bw_ref[0]  # (C, HW)
    out_ref[0, 0] = (z + x).astype(out_ref.dtype)


# -----------------------------------------------------------------------------
# Wrapper: both branches fused into one pallas_call. NCHW in, NCHW out.
# -----------------------------------------------------------------------------
def nonlocal_rgbir_forward(rgb, ir, rgb_params, ir_params, gp_params):
    B, C, H, W = rgb.shape
    HW = H * W
    Hp, Wp = H // 2, W // 2
    HWp = Hp * Wp
    ic = rgb_params["w_theta"].shape[1]
    f32, bf16 = jnp.float32, jnp.bfloat16

    # GeometryPrior produces (channels, 64); the "+ prior" only type-checks
    # when H*W/4 == 64 (see TODO(synk) above).  HW=256 is lane-aligned.
    assert HWp == 64, "NonLocalRGBIR geometry prior requires H*W/4 == 64"
    assert HW % 128 == 0

    prior_t = geometry_prior(gp_params).T.astype(f32)        # (HWp, HW), shared, resident

    # Activations: NCHW -> (modality, B, C, HW); reshape-only (no transposes).
    x_f = jnp.stack([rgb, ir], axis=0)                        # (2, B, C, H, W) f32
    x_all = x_f.reshape(2, B, C, HW)                          # f32 (exact residual)
    xp_all = (x_f.reshape(2, B, C, Hp, 2, Wp, 2)
              .max(axis=(4, 6))
              .reshape(2, B, C, HWp).astype(bf16))

    # Parameters: stack rgb/ir along a modality axis, (out_ch, in_ch) layout.
    def stack2(fn):
        return jnp.stack([fn(rgb_params), fn(ir_params)], axis=0)

    wth = stack2(lambda p: p["w_theta"].T).astype(bf16)                 # (2, ic, C)
    bth = stack2(lambda p: p["b_theta"].reshape(ic, 1)).astype(f32)     # (2, ic, 1)

    # phi + g fused weight, plus a zero row / bias 1.0 -> exact ones row in g.
    def pool_w(p):
        return jnp.concatenate([p["w_phi"].T, p["w_g"].T,
                                jnp.zeros((1, C), f32)], axis=0)        # (2ic+1, C)

    def pool_b(p):
        return jnp.concatenate([p["b_phi"], p["b_g"],
                                jnp.ones((1,), f32)]).reshape(2 * ic + 1, 1)

    wpool = stack2(pool_w).astype(bf16)                                 # (2, 2ic+1, C)
    bpool = stack2(pool_b).astype(f32)                                  # (2, 2ic+1, 1)

    # Fold eval-mode BatchNorm + conv bias into the W 1x1 conv:
    #   z = (w_W * scale)^T @ y + ((b_W - mean) * scale + beta)
    def fused_w(p):
        scale = p["bn_gamma"] * jax.lax.rsqrt(p["bn_var"] + 1e-5)       # (C,)
        return (p["w_W"] * scale[None, :]).T                            # (C, ic)

    def fused_b(p):
        scale = p["bn_gamma"] * jax.lax.rsqrt(p["bn_var"] + 1e-5)
        return ((p["b_W"] - p["bn_mean"]) * scale + p["bn_beta"]).reshape(C, 1)

    ww = stack2(fused_w).astype(bf16)                                   # (2, C, ic)
    bw = stack2(fused_b).astype(f32)                                    # (2, C, 1)

    # BlockSpecs: grid = (modality, batch); everything else resident per step.
    act_spec = pl.BlockSpec((1, 1, C, HW), lambda m, b: (m, b, 0, 0))
    pool_spec = pl.BlockSpec((1, 1, C, HWp), lambda m, b: (m, b, 0, 0))
    prior_spec = pl.BlockSpec((HWp, HW), lambda m, b: (0, 0))           # constant block -> 1 DMA

    def wspec(r, c):
        return pl.BlockSpec((1, r, c), lambda m, b: (m, 0, 0))

    out = pl.pallas_call(
        _nonlocal_kernel,
        out_shape=jax.ShapeDtypeStruct((2, B, C, HW), f32),
        grid_spec=pltpu.PrefetchScalarGridSpec(
            num_scalar_prefetch=0,
            grid=(2, B),
            in_specs=[
                act_spec, pool_spec, prior_spec,
                wspec(ic, C), wspec(ic, 1),                 # theta
                wspec(2 * ic + 1, C), wspec(2 * ic + 1, 1),  # fused phi/g (+ones row)
                wspec(C, ic), wspec(C, 1),                   # W conv (BN folded)
            ],
            out_specs=act_spec,
        ),
        compiler_params=pltpu.CompilerParams(
            dimension_semantics=("parallel", "parallel")),
    )(x_all, xp_all, prior_t, wth, bth, wpool, bpool, ww, bw)

    rgb_out = out[0].reshape(B, C, H, W)
    ir_out = out[1].reshape(B, C, H, W)
    return rgb_out, ir_out


# -----------------------------------------------------------------------------
# GeometryPrior (tiny, parameter-only; computed once in plain JAX glue).
# Returns the torch-semantics (channels=HW, 64=HWp) prior; wrapper transposes.
# -----------------------------------------------------------------------------
def geometry_prior(gp):
    pos = gp["position"].reshape(2, 64).T                       # (64, 2)
    h = jnp.maximum(pos @ gp["l1_w"] + gp["l1_b"], 0.0)         # (64, mc)
    h = h @ gp["l2_w"] + gp["l2_b"]                             # (64, channels)
    return h.T                                                  # (channels=HW, 64=HWp)


# -----------------------------------------------------------------------------
# Pure-JAX f32 reference (mirrors the PyTorch NCHW forward) for verification.
# -----------------------------------------------------------------------------
def ref_branch(x, p, prior):
    B, C, H, W = x.shape
    ic = p["w_theta"].shape[1]

    def conv1x1(inp, w, b):
        return jnp.einsum("bchw,cd->bdhw", inp, w) + b.reshape(1, -1, 1, 1)

    def maxpool(inp):
        b_, c_, h_, w_ = inp.shape
        return inp.reshape(b_, c_, h_ // 2, 2, w_ // 2, 2).max(axis=(3, 5))

    theta = conv1x1(x, p["w_theta"], p["b_theta"]).reshape(B, ic, -1)
    theta = jnp.transpose(theta, (0, 2, 1))
    phi = conv1x1(maxpool(x), p["w_phi"], p["b_phi"]).reshape(B, ic, -1)
    att = jnp.matmul(theta, phi) + prior[None]
    att = jax.nn.softmax(att, axis=-1)
    g = conv1x1(maxpool(x), p["w_g"], p["b_g"]).reshape(B, ic, -1)
    y = jnp.matmul(g, jnp.transpose(att, (0, 2, 1))).reshape(B, ic, H, W)
    z = conv1x1(y, p["w_W"], p["b_W"])
    inv_std = 1.0 / jnp.sqrt(p["bn_var"].reshape(1, -1, 1, 1) + 1e-5)
    z = (z - p["bn_mean"].reshape(1, -1, 1, 1)) * inv_std \
        * p["bn_gamma"].reshape(1, -1, 1, 1) + p["bn_beta"].reshape(1, -1, 1, 1)
    return z + x


# -----------------------------------------------------------------------------
# Deterministic parameter construction (shapes follow the module's __init__).
# NOTE: the original init zeroes BN gamma/beta (output == input); we use random
# values instead so the kernel path is actually exercised.
# -----------------------------------------------------------------------------
def make_branch_params(key, C, ic):
    ks = jax.random.split(key, 12)
    u = lambda k, s, lo=-0.5, hi=0.5: jax.random.uniform(k, s, jnp.float32, lo, hi)
    return dict(
        w_theta=u(ks[0], (C, ic)), b_theta=u(ks[1], (ic,)),
        w_phi=u(ks[2], (C, ic)), b_phi=u(ks[3], (ic,)),
        w_g=u(ks[4], (C, ic)), b_g=u(ks[5], (ic,)),
        w_W=u(ks[6], (ic, C)), b_W=u(ks[7], (C,)),
        bn_gamma=u(ks[8], (C,)), bn_beta=u(ks[9], (C,)),
        bn_mean=u(ks[10], (C,)),
        bn_var=jax.random.uniform(ks[11], (C,), jnp.float32, 0.5, 1.5),
    )


def make_gp_params(key, channels, multiplier=0.5):
    mc = int(multiplier * channels)
    ks = jax.random.split(key, 5)
    u = lambda k, s, lo=-0.5, hi=0.5: jax.random.uniform(k, s, jnp.float32, lo, hi)
    return dict(
        position=2.0 * jax.random.uniform(ks[0], (1, 2, 8, 8), jnp.float32) - 1.0,
        l1_w=u(ks[1], (2, mc)), l1_b=u(ks[2], (mc,)),
        l2_w=u(ks[3], (mc, channels)), l2_b=u(ks[4], (channels,)),
    )


@jax.jit
def nonlocal_rgbir(rgb, ir, rgb_params, ir_params, gp_params):
    return nonlocal_rgbir_forward(rgb, ir, rgb_params, ir_params, gp_params)


if __name__ == "__main__":
    B, C, H, W = 2, 4, 16, 16      # in_channels=4 -> inter_channels=2
    ic = C // 2
    HW = H * W

    root = jax.random.PRNGKey(0)
    k_rgb, k_ir, k_prgb, k_pir, k_gp = jax.random.split(root, 5)

    rgb = jax.random.normal(k_rgb, (B, C, H, W), jnp.float32)
    ir = jax.random.normal(k_ir, (B, C, H, W), jnp.float32)

    rgb_params = make_branch_params(k_prgb, C, ic)
    ir_params = make_branch_params(k_pir, C, ic)
    gp_params = make_gp_params(k_gp, channels=HW)   # see TODO(synk) above

    rgb_out, ir_out = nonlocal_rgbir(rgb, ir, rgb_params, ir_params, gp_params)
    jax.block_until_ready((rgb_out, ir_out))

    # Verify against a pure-JAX f32 NCHW reference of the PyTorch forward.
    # Kernel uses bf16 matmul operands (f32 accumulation) -> bf16 tolerances.
    prior = geometry_prior(gp_params)
    rgb_ref = ref_branch(rgb, rgb_params, prior)
    ir_ref = ref_branch(ir, ir_params, prior)
    np.testing.assert_allclose(np.asarray(rgb_out), np.asarray(rgb_ref),
                               rtol=2e-2, atol=5e-2)
    np.testing.assert_allclose(np.asarray(ir_out), np.asarray(ir_ref),
                               rtol=2e-2, atol=5e-2)

    print("KERNEL_OK")
</pallas_src>

<mosaic_0001>
module attributes {stable_mosaic.version = 11 : i64} {
  func.func @_nonlocal_kernel(%arg0: i32, %arg1: i32, %arg2: memref<1x1x4x256xf32, #tpu.memory_space<vmem>>, %arg3: memref<1x1x4x64xbf16, #tpu.memory_space<vmem>>, %arg4: memref<64x256xf32, #tpu.memory_space<vmem>>, %arg5: memref<1x2x4xbf16, #tpu.memory_space<vmem>>, %arg6: memref<1x2x1xf32, #tpu.memory_space<vmem>>, %arg7: memref<1x5x4xbf16, #tpu.memory_space<vmem>>, %arg8: memref<1x5x1xf32, #tpu.memory_space<vmem>>, %arg9: memref<1x4x2xbf16, #tpu.memory_space<vmem>>, %arg10: memref<1x4x1xf32, #tpu.memory_space<vmem>>, %arg11: memref<1x1x4x256xf32, #tpu.memory_space<vmem>>) attributes {dimension_semantics = [#tpu.dimension_semantics<parallel>, #tpu.dimension_semantics<parallel>], iteration_bounds = array<i64: 2, 2>, scalar_prefetch = 0 : i64, scratch_operands = 0 : i64, tpu.core_type = #tpu.core_type<tc>, window_params = [{transform_indices = @transform_0, window_bounds = array<i64: 1, 1, 4, 256>}, {transform_indices = @transform_1, window_bounds = array<i64: 1, 1, 4, 64>}, {pipeline_mode = #tpu.pipeline_mode<synchronous>, transform_indices = @transform_2, window_bounds = array<i64: 64, 256>}, {transform_indices = @transform_3, window_bounds = array<i64: 1, 2, 4>}, {transform_indices = @transform_4, window_bounds = array<i64: 1, 2, 1>}, {transform_indices = @transform_5, window_bounds = array<i64: 1, 5, 4>}, {transform_indices = @transform_6, window_bounds = array<i64: 1, 5, 1>}, {transform_indices = @transform_7, window_bounds = array<i64: 1, 4, 2>}, {transform_indices = @transform_8, window_bounds = array<i64: 1, 4, 1>}, {transform_indices = @transform_9, window_bounds = array<i64: 1, 1, 4, 256>}]} {
    %c0 = arith.constant 0 : index
    %c0_0 = arith.constant 0 : index
    %c0_1 = arith.constant 0 : index
    %c0_2 = arith.constant 0 : index
    %0 = vector.load %arg2[%c0, %c0_0, %c0_1, %c0_2] : memref<1x1x4x256xf32, #tpu.memory_space<vmem>>, vector<1x1x4x256xf32>
    %1 = vector.shape_cast %0 : vector<1x1x4x256xf32> to vector<4x256xf32>
    %c0_3 = arith.constant 0 : index
    %c0_4 = arith.constant 0 : index
    %c0_5 = arith.constant 0 : index
    %c0_6 = arith.constant 0 : index
    %2 = vector.load %arg3[%c0_3, %c0_4, %c0_5, %c0_6] : memref<1x1x4x64xbf16, #tpu.memory_space<vmem>>, vector<1x1x4x64xbf16>
    %3 = vector.shape_cast %2 : vector<1x1x4x64xbf16> to vector<4x64xbf16>
    %4 = arith.truncf %1 : vector<4x256xf32> to vector<4x256xbf16>
    %c0_7 = arith.constant 0 : index
    %c0_8 = arith.constant 0 : index
    %c0_9 = arith.constant 0 : index
    %5 = vector.load %arg5[%c0_7, %c0_8, %c0_9] : memref<1x2x4xbf16, #tpu.memory_space<vmem>>, vector<1x2x4xbf16>
    %6 = vector.shape_cast %5 : vector<1x2x4xbf16> to vector<2x4xbf16>
    %cst = arith.constant dense<0.000000e+00> : vector<2x256xf32>
    %7 = tpu.matmul %6, %4, %cst {dimension_numbers = #tpu.dot_dimension_numbers<[1], [0], [0], [1], [0, 0, 1, 1], [], []>} : vector<2x4xbf16>, vector<4x256xbf16>, vector<2x256xf32> -> vector<2x256xf32>
    %c0_10 = arith.constant 0 : index
    %c0_11 = arith.constant 0 : index
    %c0_12 = arith.constant 0 : index
    %8 = vector.load %arg6[%c0_10, %c0_11, %c0_12] : memref<1x2x1xf32, #tpu.memory_space<vmem>>, vector<1x2x1xf32>
    %9 = vector.shape_cast %8 : vector<1x2x1xf32> to vector<2x1xf32>
    %10 = vector.broadcast %9 : vector<2x1xf32> to vector<2x256xf32>
    %11 = arith.addf %7, %10 : vector<2x256xf32>
    %c0_13 = arith.constant 0 : index
    %c0_14 = arith.constant 0 : index
    %c0_15 = arith.constant 0 : index
    %12 = vector.load %arg7[%c0_13, %c0_14, %c0_15] : memref<1x5x4xbf16, #tpu.memory_space<vmem>>, vector<1x5x4xbf16>
    %13 = vector.shape_cast %12 : vector<1x5x4xbf16> to vector<5x4xbf16>
    %cst_16 = arith.constant dense<0.000000e+00> : vector<5x64xf32>
    %14 = tpu.matmul %13, %3, %cst_16 {dimension_numbers = #tpu.dot_dimension_numbers<[1], [0], [0], [1], [0, 0, 1, 1], [], []>} : vector<5x4xbf16>, vector<4x64xbf16>, vector<5x64xf32> -> vector<5x64xf32>
    %c0_17 = arith.constant 0 : index
    %c0_18 = arith.constant 0 : index
    %c0_19 = arith.constant 0 : index
    %15 = vector.load %arg8[%c0_17, %c0_18, %c0_19] : memref<1x5x1xf32, #tpu.memory_space<vmem>>, vector<1x5x1xf32>
    %16 = vector.shape_cast %15 : vector<1x5x1xf32> to vector<5x1xf32>
    %17 = vector.broadcast %16 : vector<5x1xf32> to vector<5x64xf32>
    %18 = arith.addf %14, %17 : vector<5x64xf32>
    %19 = vector.extract_strided_slice %18 {offsets = [0, 0], sizes = [2, 64], strides = [1, 1]} : vector<5x64xf32> to vector<2x64xf32>
    %20 = vector.extract_strided_slice %18 {offsets = [2, 0], sizes = [3, 64], strides = [1, 1]} : vector<5x64xf32> to vector<3x64xf32>
    %21 = arith.truncf %19 : vector<2x64xf32> to vector<2x64xbf16>
    %22 = arith.truncf %11 : vector<2x256xf32> to vector<2x256xbf16>
    %cst_20 = arith.constant dense<0.000000e+00> : vector<64x256xf32>
    %23 = tpu.matmul %21, %22, %cst_20 {dimension_numbers = #tpu.dot_dimension_numbers<[0], [0], [1], [1], [0, 1, 1, 1], [], []>} : vector<2x64xbf16>, vector<2x256xbf16>, vector<64x256xf32> -> vector<64x256xf32>
    %c0_21 = arith.constant 0 : index
    %c0_22 = arith.constant 0 : index
    %24 = vector.load %arg4[%c0_21, %c0_22] : memref<64x256xf32, #tpu.memory_space<vmem>>, vector<64x256xf32>
    %25 = arith.addf %23, %24 : vector<64x256xf32>
    %cst_23 = arith.constant dense<0xFF800000> : vector<256xf32>
    %26 = vector.multi_reduction <maximumf>, %25, %cst_23 [0] : vector<64x256xf32> to vector<256xf32>
    %27 = vector.shape_cast %26 : vector<256xf32> to vector<1x256xf32>
    %28 = vector.broadcast %27 : vector<1x256xf32> to vector<64x256xf32>
    %29 = arith.subf %25, %28 : vector<64x256xf32>
    %30 = math.exp %29 : vector<64x256xf32>
    %31 = arith.truncf %30 : vector<64x256xf32> to vector<64x256xbf16>
    %32 = arith.truncf %20 : vector<3x64xf32> to vector<3x64xbf16>
    %cst_24 = arith.constant dense<0.000000e+00> : vector<3x256xf32>
    %33 = tpu.matmul %32, %31, %cst_24 {dimension_numbers = #tpu.dot_dimension_numbers<[1], [0], [0], [1], [0, 0, 1, 1], [], []>} : vector<3x64xbf16>, vector<64x256xbf16>, vector<3x256xf32> -> vector<3x256xf32>
    %34 = vector.extract_strided_slice %33 {offsets = [2, 0], sizes = [1, 256], strides = [1, 1]} : vector<3x256xf32> to vector<1x256xf32>
    %35 = vector.extract_strided_slice %33 {offsets = [0, 0], sizes = [2, 256], strides = [1, 1]} : vector<3x256xf32> to vector<2x256xf32>
    %36 = tpu.reciprocal %34 {approx = true} : vector<1x256xf32> -> vector<1x256xf32>
    %37 = vector.broadcast %36 : vector<1x256xf32> to vector<2x256xf32>
    %38 = arith.mulf %35, %37 : vector<2x256xf32>
    %c0_25 = arith.constant 0 : index
    %c0_26 = arith.constant 0 : index
    %c0_27 = arith.constant 0 : index
    %39 = vector.load %arg9[%c0_25, %c0_26, %c0_27] : memref<1x4x2xbf16, #tpu.memory_space<vmem>>, vector<1x4x2xbf16>
    %40 = vector.shape_cast %39 : vector<1x4x2xbf16> to vector<4x2xbf16>
    %41 = arith.truncf %38 : vector<2x256xf32> to vector<2x256xbf16>
    %cst_28 = arith.constant dense<0.000000e+00> : vector<4x256xf32>
    %42 = tpu.matmul %40, %41, %cst_28 {dimension_numbers = #tpu.dot_dimension_numbers<[1], [0], [0], [1], [0, 0, 1, 1], [], []>} : vector<4x2xbf16>, vector<2x256xbf16>, vector<4x256xf32> -> vector<4x256xf32>
    %c0_29 = arith.constant 0 : index
    %c0_30 = arith.constant 0 : index
    %c0_31 = arith.constant 0 : index
    %43 = vector.load %arg10[%c0_29, %c0_30, %c0_31] : memref<1x4x1xf32, #tpu.memory_space<vmem>>, vector<1x4x1xf32>
    %44 = vector.shape_cast %43 : vector<1x4x1xf32> to vector<4x1xf32>
    %45 = vector.broadcast %44 : vector<4x1xf32> to vector<4x256xf32>
    %46 = arith.addf %42, %45 : vector<4x256xf32>
    %47 = arith.addf %46, %1 : vector<4x256xf32>
    %c0_32 = arith.constant 0 : index
    %c0_33 = arith.constant 0 : index
    %c0_34 = arith.constant 0 : index
    %c0_35 = arith.constant 0 : index
    %48 = vector.load %arg11[%c0_32, %c0_33, %c0_34, %c0_35] : memref<1x1x4x256xf32, #tpu.memory_space<vmem>>, vector<1x1x4x256xf32>
    %49 = vector.shape_cast %48 : vector<1x1x4x256xf32> to vector<4x256xf32>
    %50 = vector.shape_cast %47 : vector<4x256xf32> to vector<1x1x4x256xf32>
    tpu.vector_store %arg11[%c0_32, %c0_33, %c0_34, %c0_35], %50 {strides = array<i32>} : memref<1x1x4x256xf32, #tpu.memory_space<vmem>>, vector<1x1x4x256xf32>,
    return
  }
  func.func @transform_0(%arg0: i32, %arg1: i32) -> (i32, i32, i32, i32) {
    %c0_i32 = arith.constant 0 : i32
    %c0_i32_0 = arith.constant 0 : i32
    %c0_i32_1 = arith.constant 0 : i32
    return %arg0, %arg1, %c0_i32, %c0_i32_0 : i32, i32, i32, i32
  }
  func.func @transform_1(%arg0: i32, %arg1: i32) -> (i32, i32, i32, i32) {
    %c0_i32 = arith.constant 0 : i32
    %c0_i32_0 = arith.constant 0 : i32
    %c0_i32_1 = arith.constant 0 : i32
    return %arg0, %arg1, %c0_i32, %c0_i32_0 : i32, i32, i32, i32
  }
  func.func @transform_2(%arg0: i32, %arg1: i32) -> (i32, i32) {
    %c0_i32 = arith.constant 0 : i32
    %c0_i32_0 = arith.constant 0 : i32
    %c0_i32_1 = arith.constant 0 : i32
    return %c0_i32, %c0_i32_0 : i32, i32
  }
  func.func @transform_3(%arg0: i32, %arg1: i32) -> (i32, i32, i32) {
    %c0_i32 = arith.constant 0 : i32
    %c0_i32_0 = arith.constant 0 : i32
    %c0_i32_1 = arith.constant 0 : i32
    return %arg0, %c0_i32, %c0_i32_0 : i32, i32, i32
  }
  func.func @transform_4(%arg0: i32, %arg1: i32) -> (i32, i32, i32) {
    %c0_i32 = arith.constant 0 : i32
    %c0_i32_0 = arith.constant 0 : i32
    %c0_i32_1 = arith.constant 0 : i32
    return %arg0, %c0_i32, %c0_i32_0 : i32, i32, i32
  }
  func.func @transform_5(%arg0: i32, %arg1: i32) -> (i32, i32, i32) {
    %c0_i32 = arith.constant 0 : i32
    %c0_i32_0 = arith.constant 0 : i32
    %c0_i32_1 = arith.constant 0 : i32
    return %arg0, %c0_i32, %c0_i32_0 : i32, i32, i32
  }
  func.func @transform_6(%arg0: i32, %arg1: i32) -> (i32, i32, i32) {
    %c0_i32 = arith.constant 0 : i32
    %c0_i32_0 = arith.constant 0 : i32
    %c0_i32_1 = arith.constant 0 : i32
    return %arg0, %c0_i32, %c0_i32_0 : i32, i32, i32
  }
  func.func @transform_7(%arg0: i32, %arg1: i32) -> (i32, i32, i32) {
    %c0_i32 = arith.constant 0 : i32
    %c0_i32_0 = arith.constant 0 : i32
    %c0_i32_1 = arith.constant 0 : i32
    return %arg0, %c0_i32, %c0_i32_0 : i32, i32, i32
  }
  func.func @transform_8(%arg0: i32, %arg1: i32) -> (i32, i32, i32) {
    %c0_i32 = arith.constant 0 : i32
    %c0_i32_0 = arith.constant 0 : i32
    %c0_i32_1 = arith.constant 0 : i32
    return %arg0, %c0_i32, %c0_i32_0 : i32, i32, i32
  }
  func.func @transform_9(%arg0: i32, %arg1: i32) -> (i32, i32, i32, i32) {
    %c0_i32 = arith.constant 0 : i32
    %c0_i32_0 = arith.constant 0 : i32
    %c0_i32_1 = arith.constant 0 : i32
    return %arg0, %arg1, %c0_i32, %c0_i32_0 : i32, i32, i32, i32
  }
}

</mosaic_0001>

<bundles_post_ra>
// kernel: squeeze.2
= control target key start
LH: loop header
LB: loop body
LE: loop exit
PB: predicated region body
PF: predicated region fallthrough
CT: control target
= control target key end

     0   :  { %s290_s0 = inlined_call_operand.vmem [shape: f32[1,2,4,256], index: 0, kind: input, shape index: {}]   ;;  %s291_s1 = inlined_call_operand.hbm [shape: f32[2,4,16,16], index: 1, kind: output, shape index: {}]  }
   0x1   :  { %v179_v0 = vld [vmem:[%s290_s0 + $0x4] sm:$0xf]  ;;  %v19_v1 = vld [vmem:[%s290_s0] sm:$0xf]  ;;  %v177_v2 = vld [vmem:[%s290_s0 + $0xc] sm:$0xf] }
   0x2   :  { %18 = vst [vmem:[#allocation2 + $0x8] sm:$0xf] %v179_v0  ;;  %20 = vst [vmem:[#allocation2] sm:$0xf] %v19_v1  ;;  %v178_v3 = vld [vmem:[%s290_s0 + $0x8] sm:$0xf] }
   0x3   :  { %9 = vst [vmem:[#allocation2 + $0x18] sm:$0xf] %v177_v2  ;;  %14 = vst [vmem:[#allocation2 + $0x10] sm:$0xf] %v178_v3 }
   0x4   :  { %2 = vsyncpa [#allocation1], 0  ;;  %vm22_vm0 = vcmask 130048   ;;  %s212_s0 = smov 96   ;;  %s213_s14 = smov 112  }
   0x5   :  { %s214_s15 = smov 80   ;;  %s215_s16 = smov 64  }
   0x6   :  { %s216_s17 = smov 48   ;;  %s217_s18 = smov 32  }
   0x7   :  { %s218_s19 = smov 16   ;;  %s219_s20 = smov [#allocation0]  }
   0x8   :  { %s169_s21 = sshll.u32 %s219_s20, 4  ;;  %s170_s21 = int_to_ptr.vmem [resolvable:$true] %s169_s21 }
   0x9   :  { %v63_v4 = vld.sshfl [vmem:[#allocation2] sm:$0xff pattern:$0xb3a29180]   ;;  %s188_s22 = scalar_lea.vmem %s170_s21, 2048  ;;  %p193_p1 = scmp.lt.s32.totalorder %s170_s21, %s170_s21 }
   0xa   :  { %v21_v5 = vld [vmem:[#allocation2] sm:$0xf]   ;;  %64 = vrot.lane.b32.xlu1 %v63_v4, %s212_s0  ;;  %47 = vrot.lane.b32.xlu0 %v63_v4, %s213_s14  ;;  %v26_v6 = vld [vmem:[#allocation2 + $0x8] sm:$0xf]   ;;  %v33_v8 = vld [vmem:[#allocation2 + $0x10] sm:$0xf]   ;;  %p189_p0 = scmp.ne.s32.totalorder %s170_s21, %s188_s22  ;;  %p194_p2 = scmp.lt.s32.totalorder %s188_s22, %s188_s22 }
   0xb   :  { %23 = vst.msk [vmem:[#allocation0] ss:$16 sm:$0x3] %vm22_vm0, %v21_v5   ;;  %24 = vst.msk [vmem:[#allocation0] ss:$16 sm:$0xc] %vm22_vm0, %v21_v5  }
   0xc   :  { %v72_v7 = vld.sshfl [vmem:[#allocation2 + $0x10] sm:$0xff pattern:$0xb3a29180]   ;;  %29 = vst.msk [vmem:[#allocation0 + $0x8] ss:$16 sm:$0x3] %vm22_vm0, %v26_v6   ;;  %p195_p3 = por %p194_p2, %p193_p1 }
   0xd   :  { %31 = vst.msk [vmem:[#allocation0 + $0x8] ss:$16 sm:$0xc] %vm22_vm0, %v26_v6   ;;  %v40_v9 = vld [vmem:[#allocation2 + $0x18] sm:$0xf]  }
   0xe   :  { %36 = vst.msk [vmem:[#allocation0 + $0x40] ss:$16 sm:$0x3] %vm22_vm0, %v33_v8   ;;  %38 = vst.msk [vmem:[#allocation0 + $0x40] ss:$16 sm:$0xc] %vm22_vm0, %v33_v8   ;;  %73 = vrot.lane.b32.xlu1 %v72_v7, %s212_s0  ;;  %56 = vrot.lane.b32.xlu0 %v72_v7, %s213_s14  ;;  %p196_p4 = pnand %p195_p3, %p189_p0 }
   0xf   :  { %43 = vst.msk [vmem:[#allocation0 + $0x48] ss:$16 sm:$0x3] %vm22_vm0, %v40_v9   ;;  %45 = vst.msk [vmem:[#allocation0 + $0x48] ss:$16 sm:$0xc] %vm22_vm0, %v40_v9  }
  0x12   :  { %90 = vrot.lane.b32.xlu1 %v72_v7, %s214_s15  ;;  %81 = vrot.lane.b32.xlu0 %v63_v4, %s214_s15 }
  0x16   :  { %107 = vrot.lane.b32.xlu1 %v72_v7, %s215_s16  ;;  %98 = vrot.lane.b32.xlu0 %v63_v4, %s215_s16 }
  0x1a   :  { %124 = vrot.lane.b32.xlu1 %v72_v7, %s216_s17  ;;  %115 = vrot.lane.b32.xlu0 %v63_v4, %s216_s17 }
  0x1e   :  { %141 = vrot.lane.b32.xlu1 %v72_v7, %s217_s18  ;;  %132 = vrot.lane.b32.xlu0 %v63_v4, %s217_s18 }
  0x22   :  { %158 = vrot.lane.b32.xlu1 %v72_v7, %s218_s19  ;;  %149 = vrot.lane.b32.xlu0 %v63_v4, %s218_s19 }
  0x7c   :  { %v65_v10 = vpop.permute.xlu1 %64   ;;  %v48_v11 = vpop.permute.xlu0 %47  }
  0x7d   :  { %68 = vst.msk [vmem:[#allocation0 + $0x2] ss:$8 sm:$0xf] %vm22_vm0, %v65_v10   ;;  %70 = vst.msk [vmem:[#allocation0 + $0x2] ss:$8 sm:$0xf0] %vm22_vm0, %v65_v10  }
  0x7e   :  { %51 = vst.msk [vmem:[#allocation0 + $0x1] ss:$8 sm:$0xf] %vm22_vm0, %v48_v11   ;;  %53 = vst.msk [vmem:[#allocation0 + $0x1] ss:$8 sm:$0xf0] %vm22_vm0, %v48_v11  }
  0x80   :  { %v74_v12 = vpop.permute.xlu1 %73   ;;  %v57_v13 = vpop.permute.xlu0 %56  }
  0x81   :  { %77 = vst.msk [vmem:[#allocation0 + $0x42] ss:$8 sm:$0xf] %vm22_vm0, %v74_v12   ;;  %79 = vst.msk [vmem:[#allocation0 + $0x42] ss:$8 sm:$0xf0] %vm22_vm0, %v74_v12  }
  0x82   :  { %60 = vst.msk [vmem:[#allocation0 + $0x41] ss:$8 sm:$0xf] %vm22_vm0, %v57_v13   ;;  %62 = vst.msk [vmem:[#allocation0 + $0x41] ss:$8 sm:$0xf0] %vm22_vm0, %v57_v13  }
  0x84   :  { %v91_v14 = vpop.permute.xlu1 %90   ;;  %v82_v15 = vpop.permute.xlu0 %81  }
  0x85   :  { %94 = vst.msk [vmem:[#allocation0 + $0x43] ss:$8 sm:$0xf] %vm22_vm0, %v91_v14   ;;  %96 = vst.msk [vmem:[#allocation0 + $0x43] ss:$8 sm:$0xf0] %vm22_vm0, %v91_v14  }
  0x86   :  { %85 = vst.msk [vmem:[#allocation0 + $0x3] ss:$8 sm:$0xf] %vm22_vm0, %v82_v15   ;;  %87 = vst.msk [vmem:[#allocation0 + $0x3] ss:$8 sm:$0xf0] %vm22_vm0, %v82_v15  }
  0x88   :  { %v108_v16 = vpop.permute.xlu1 %107   ;;  %v99_v17 = vpop.permute.xlu0 %98  }
  0x89   :  { %111 = vst.msk [vmem:[#allocation0 + $0x44] ss:$8 sm:$0xf] %vm22_vm0, %v108_v16   ;;  %113 = vst.msk [vmem:[#allocation0 + $0x44] ss:$8 sm:$0xf0] %vm22_vm0, %v108_v16  }
  0x8a   :  { %102 = vst.msk [vmem:[#allocation0 + $0x4] ss:$8 sm:$0xf] %vm22_vm0, %v99_v17   ;;  %104 = vst.msk [vmem:[#allocation0 + $0x4] ss:$8 sm:$0xf0] %vm22_vm0, %v99_v17  }
  0x8c   :  { %v125_v18 = vpop.permute.xlu1 %124   ;;  %v116_v19 = vpop.permute.xlu0 %115  }
  0x8d   :  { %128 = vst.msk [vmem:[#allocation0 + $0x45] ss:$8 sm:$0xf] %vm22_vm0, %v125_v18   ;;  %130 = vst.msk [vmem:[#allocation0 + $0x45] ss:$8 sm:$0xf0] %vm22_vm0, %v125_v18  }
  0x8e   :  { %119 = vst.msk [vmem:[#allocation0 + $0x5] ss:$8 sm:$0xf] %vm22_vm0, %v116_v19   ;;  %121 = vst.msk [vmem:[#allocation0 + $0x5] ss:$8 sm:$0xf0] %vm22_vm0, %v116_v19  }
  0x90   :  { %v142_v20 = vpop.permute.xlu1 %141   ;;  %v133_v21 = vpop.permute.xlu0 %132  }
  0x91   :  { %145 = vst.msk [vmem:[#allocation0 + $0x46] ss:$8 sm:$0xf] %vm22_vm0, %v142_v20   ;;  %147 = vst.msk [vmem:[#allocation0 + $0x46] ss:$8 sm:$0xf0] %vm22_vm0, %v142_v20  }
  0x92   :  { %136 = vst.msk [vmem:[#allocation0 + $0x6] ss:$8 sm:$0xf] %vm22_vm0, %v133_v21   ;;  %138 = vst.msk [vmem:[#allocation0 + $0x6] ss:$8 sm:$0xf0] %vm22_vm0, %v133_v21  }
  0x94   :  { %v159_v22 = vpop.permute.xlu1 %158   ;;  %v150_v23 = vpop.permute.xlu0 %149  }
  0x95   :  { %162 = vst.msk [vmem:[#allocation0 + $0x47] ss:$8 sm:$0xf] %vm22_vm0, %v159_v22   ;;  %164 = vst.msk [vmem:[#allocation0 + $0x47] ss:$8 sm:$0xf0] %vm22_vm0, %v159_v22  }
  0x96   :  { %153 = vst.msk [vmem:[#allocation0 + $0x7] ss:$8 sm:$0xf] %vm22_vm0, %v150_v23   ;;  %155 = vst.msk [vmem:[#allocation0 + $0x7] ss:$8 sm:$0xf0] %vm22_vm0, %v150_v23  }
  0x97   :  { %199 = shalt.err (!%p196_p4)
}
  0x98   :  { %s200_s25 = scalar_lea.hbm %s291_s1, 2048 }
  0x99   :  { %p201_p5 = scmp.ne.s32.totalorder %s291_s1, %s200_s25  ;;  %p204_p6 = scmp.lt.u32.totalorder %s200_s25, %s291_s1 }
  0x9b   :  { %p206_p7 = pnand %p204_p6, %p201_p5 }
  0x9d   :  { %209 = shalt.err (!%p206_p7)
}
  0x9e   :  { %172 = dma.vmem_to_hbm [thread:$0]  %s170_s21, 2048, %s291_s1, [#allocation1]  }
  0x9f   :  { %210 = dma.done.wait [#allocation1], 2048  }
  0xa0   :  { %211 = vsyncadd [#allocation1], 4294965248 }
  0xa1   :  { %174 = vsyncpa [#allocation1], 1 }

// kernel: nonlocal_rgbir.1
= control target key start
LH: loop header
LB: loop body
LE: loop exit
PB: predicated region body
PF: predicated region fallthrough
CT: control target
= control target key end

     0   :  { %s1350_s30 = smov 0   ;;  %s1352_s10 = smov 0   ;;  %s1588_s0 = inlined_call_operand.vmem [shape: f32[2,2,4,256], index: 0, kind: input, shape index: {}]   ;;  %s1589_s1 = inlined_call_operand.vmem [shape: bf16[2,2,4,64], index: 1, kind: input, shape index: {}]   ;;  %s1590_s2 = inlined_call_operand.vmem [shape: f32[64,256], index: 2, kind: input, shape index: {}]   ;;  %s1591_s3 = inlined_call_operand.vmem [shape: bf16[2,2,4], index: 3, kind: input, shape index: {}]   ;;  %s1592_s4 = inlined_call_operand.vmem [shape: f32[2,2,1], index: 4, kind: input, shape index: {}]   ;;  %s1593_s5 = inlined_call_operand.vmem [shape: bf16[2,5,4], index: 5, kind: input, shape index: {}]   ;;  %s1594_s6 = inlined_call_operand.vmem [shape: f32[2,5,1], index: 6, kind: input, shape index: {}]   ;;  %s1595_s7 = inlined_call_operand.vmem [shape: bf16[2,4,2], index: 7, kind: input, shape index: {}]   ;;  %s1596_s8 = inlined_call_operand.vmem [shape: f32[2,4,1], index: 8, kind: input, shape index: {}]   ;;  %s1597_s9 = inlined_call_operand.vmem [shape: f32[2,2,4,256], index: 9, kind: output, shape index: {}]  }
   0x1   :  { %s1354_s11 = smov 0   ;;  %s1356_s12 = smov 0  }
   0x2   :  { %s1358_s13 = smov 0  }
   0x3 LB: > { %s28_s14 = sadd.s32 1, %s1287_s11  ;;  %s31_s15 = sadd.s32 1, %s1291_s12  ;;  %s1295_s13 = sphi %s1358_s13, %s19_s13   ;;  %s1291_s12 = sphi %s1356_s12, %s1601_s12   ;;  %s1287_s11 = sphi %s1354_s11, %s1600_s11   ;;  %s1283_s10 = sphi %s1352_s10, %s1599_s10   ;;  %s1279_s30 = sphi %s1350_s30, %s1598_s30  }
   0x4   : > { %p29_p0 = scmp.ge.s32.totalorder %s28_s14, 2  ;;  %p1140_p1 = scmp.ge.s32.totalorder %s1295_s13, 1 }
   0x5   : > { %p375_p2 = scmp.lt.s32.totalorder %s1295_s13, 5 }
   0x6   : > { %s1603_s14 = smov (%p29_p0, %s28_s14), 0  ;;  %s1605_s15 = smov (!%p29_p0, %s31_s15), %s1291_s12 }
   0x7   : > { %p376_p3 = pnand %p1140_p1, %p375_p2  ;;  %p33_p4 = scmp.ge.s32.totalorder %s1605_s15, 2 }
   0x8   : > { %p450_p5 = scmp.lt.s32.totalorder (!%p376_p3), %s1283_s10, 1  ;;  %p452_p6 = scmp.lt.s32.totalorder (!%p376_p3), %s1279_s30, 1  ;;  %v1297_v0 = vmov (!%p376_p3), 0.0   ;;  %vm1298_vm0 = vmmov (!%p376_p3), 0   ;;  %v1299_v1 = vmov (!%p376_p3), 0   ;;  %vm518_vm1 = vcmask (!%p376_p3), 1041408  }
   0x9   : > { %s1607_s15 = smov (%p33_p4, %s1605_s15), 0  ;;  %379 = sbr.rel (%p376_p3) target bundleno = 1092 (0x444), region = 56 }
   0xa   : > { %1169 = vmatprep.subr.bf16.mxu1 (!%p376_p3), %v1297_v0  ;;  %1171 = vmatprep.mubr.msk.bf16.mxu1 (!%p376_p3), %vm1298_vm0, %v1297_v0  ;;  %vm514_vm2 = vcmask (!%p376_p3), 31744   ;;  %vm667_vm3 = vcmask (!%p376_p3), 1040384   ;;  %vm654_vm4 = vcmask (!%p376_p3), 15360   ;;  %v622_v38 = vld [vmem:[%s1590_s2] sm:$0xff] (!%p376_p3)  ;;  %v623_v40 = vld [vmem:[%s1590_s2 + $0x8] sm:$0xff] (!%p376_p3)  ;;  %v624_v42 = vld [vmem:[%s1590_s2 + $0x10] sm:$0xff] (!%p376_p3) }
   0xb   : > { %557 = vmatprep.mubr.bf16.mxu0 (!%p376_p3), %v1299_v1  ;;  %1218 = vset.pattern.permute.xlu0 (!%p376_p3), %v1299_v1  ;;  %v626_v39 = vld [vmem:[%s1590_s2 + $0x20] sm:$0xff] (!%p376_p3)  ;;  %v627_v41 = vld [vmem:[%s1590_s2 + $0x28] sm:$0xff] (!%p376_p3)  ;;  %v628_v44 = vld [vmem:[%s1590_s2 + $0x30] sm:$0xff] (!%p376_p3)  ;;  %vm831_vm5 = vcmask (!%p376_p3), 523264  }
   0xc   : > { %v625_v46 = vld [vmem:[%s1590_s2 + $0x18] sm:$0xff] (!%p376_p3)  ;;  %v630_v62 = vld [vmem:[%s1590_s2 + $0x40] sm:$0xff] (!%p376_p3)  ;;  %v631_v63 = vld [vmem:[%s1590_s2 + $0x48] sm:$0xff] (!%p376_p3) }
   0xd   : > { %v629_v49 = vld [vmem:[%s1590_s2 + $0x38] sm:$0xff] (!%p376_p3) }
  0x10   : > { %s1609_s10 = smov (!%p450_p5, %s1283_s10), 1  ;;  %s1611_s30 = smov (!%p452_p6, %s1279_s30), 1 }
  0x11   : > { %s1385_s16 = sshll.u32 %s1609_s10, 1  ;;  %s1388_s17 = sshll.u32 %s1609_s10, 2 }
  0x12   : > { %s1141_s18 = sshll.u32 %s1611_s30, 1  ;;  %s464_s19 = sadd.s32 %s1385_s16, %s1611_s30 }
  0x13   : > { %s1145_s20 = sshll.u32 %s464_s19, 1  ;;  %s1392_s21 = sadd.s32 %s1388_s17, %s1141_s18 }
  0x14   : > { %s466_s24 = scalar_lea.vmem %s1589_s1, %s1145_s20  ;;  %s1143_s25 = sshll.u32 %s1392_s21, 2 }
  0x15   : > { %v501_v2 = vld [vmem:[%s466_s24] sm:$0x3]  ;;  %s458_s28 = scalar_lea.vmem %s1588_s0, %s1143_s25  ;;  %s477_s19 = scalar_lea.vmem %s1593_s5, %s1388_s17 }
  0x16   : > { %v577_v3 = vsel %vm518_vm1, %v501_v2, 0  ;;  %v1408_v4 = vld [vmem:[%s458_s28] sm:$0xff]  ;;  %s1148_s18 = sshll.u32 %s1609_s10, 3  ;;  %s473_s27 = scalar_lea.vmem %s1592_s4, %s1385_s16  ;;  %v632_v2 = vld [vmem:[%s1590_s2 + $0x50] sm:$0xff] }
  0x17   : > { %1170 = vmatpush3.bf16.msra.mxu1 %v577_v3  ;;  %v1413_v5 = vcombine.high %v1408_v4, %v1408_v4  ;;  %v566_v6 = vld [vmem:[%s477_s19] sm:$0x7]  ;;  %v505_v7 = vpack.c.bf16 %v1408_v4, %v1408_v4  ;;  %s481_s23 = scalar_lea.vmem %s1594_s6, %s1148_s18  ;;  %s469_s30 = scalar_lea.vmem %s1591_s3, %s1609_s10 }
  0x18   : > { %v567_v8 = vld [vmem:[%s481_s23] sm:$0x1f]  ;;  %s489_s29 = scalar_lea.vmem %s1596_s8, %s1388_s17  ;;  %s485_s10 = scalar_lea.vmem %s1595_s7, %s1385_s16 }
  0x19   : > { %v506_v9 = vpack.c.bf16 %v1413_v5, %v1413_v5  ;;  %v520_v10 = vsel %vm518_vm1, %v505_v7, 0  ;;  %570 = vperm.xlu0 %1218, %v567_v8   ;;  %v508_v11 = vld [vmem:[%s473_s27] sm:$0x3]  ;;  %v633_v7 = vld [vmem:[%s1590_s2 + $0x58] sm:$0xff]  ;;  %s498_s18 = scalar_lea.vmem %s1597_s9, %s1143_s25 }
  0x1a   : > { %1172 = vmatmul.mubr.msk.bf16.vlgmr.msra.gmra.mrb[0].mxu1 %vm514_vm2, %v566_v6  ;;  %v507_v12 = vld [vmem:[%s469_s30] sm:$0x1] }
  0x1b   : > { %1154 = vmatprep.subr.msk.bf16.mxu0 %vm518_vm1, %v506_v9  ;;  %867 = vmatprep.mubr.bf16.mxu1 %v1299_v1 }
  0x1c   : > { %526 = vmatpush1.bf16.msra.mxu0 %v520_v10 }
  0x1d   : > { %511 = vperm.xlu0 %1218, %v508_v11  }
  0x1f   : > { %1155 = vmatmul.mubr.msk.bf16.vlgmr.msra.gmra.mrb[0].mxu0 %vm514_vm2, %v507_v12 }
  0x20   : > { %706 = vmatprep.mubr.bf16.mxu0 %v1299_v1 }
  0x98   : > { %v571_v13 = vpop.permute.xlu0 %570 }
  0x9c   : > { %v512_v20 = vpop.permute.xlu0 %511 }
  0xed   : > { %v613_v14 = vpop.f32.mrb[0].mxu1 }
  0xee   : > { %v614_v15 = vadd.f32 %v613_v14, %v571_v13  ;;  %v1173_v16 = vpop.f32.mrb[1].mxu1 }
  0xef   : > { %v616_v17 = vpop.f32.mrb[2].mxu1 }
  0xf0   : > { %v1436_v18 = vpack.c.bf16 %v614_v15, %v614_v15  ;;  %v1174_v19 = vpop.f32.mrb[3].mxu1  ;;  %v634_v17 = vld [vmem:[%s1590_s2 + $0x60] sm:$0xff] }
  0xf1   : > { %v635_v19 = vld [vmem:[%s1590_s2 + $0x68] sm:$0xff] }
  0xf2   : > { %v559_v21 = vpop.f32.mrb[0].mxu0  ;;  %638 = vxpose.xlu1.c.b16.start.end [1/1] (short) (narrow) %v1436_v18, 64 }
  0xf3   : > { %v560_v22 = vadd.f32 %v559_v21, %v512_v20  ;;  %v561_v23 = vpop.f32.mrb[1].mxu0  ;;  %v636_v21 = vld [vmem:[%s1590_s2 + $0x70] sm:$0xff] }
  0xf4   : > { %v562_v24 = vadd.f32 %v561_v23, %v512_v20  ;;  %v563_v25 = vpop.f32.mrb[2].mxu0 }
  0xf5   : > { %v620_v26 = vpack.c.bf16 %v560_v22, %v560_v22  ;;  %v564_v27 = vpop.f32.mrb[3].mxu0 }
  0xf6   : > { %v621_v28 = vpack.c.bf16 %v562_v24, %v562_v24  ;;  %1219 = vset.pattern.permute.xlu1 %v1299_v1  ;;  %v637_v24 = vld [vmem:[%s1590_s2 + $0x78] sm:$0xff] }
  0xf7   : > { %v669_v29 = vsel %vm667_vm3, %v620_v26, 0 }
  0xf8   : > { %1157 = vmatprep.subr.msk.bf16.mxu0 %vm667_vm3, %v621_v28 }
  0xf9   : > { %675 = vmatpush1.bf16.msra.mxu0 %v669_v29 }
 0x158   : > { %v646_v30 = vpop.trf.xlu1 }
 0x159   : > { %1158 = vmatmul.mubr.msk.bf16.vlgmr.msra.gmra.mrb[4].mxu0 %vm654_vm4, %v646_v30 }
 0x15a   : > { %716 = vmatprep.mubr.bf16.mxu0 %v1299_v1 }
 0x15c   : > { %v647_v31 = vpop.trf.xlu1 }
 0x160   : > { %v648_v32 = vpop.trf.xlu1 }
 0x161   : > { %1159 = vmatmul.mubr.msk.bf16.gmra.mrb[8].mxu0 %vm654_vm4, %v647_v31 }
 0x162   : > { %726 = vmatprep.mubr.bf16.mxu0 %v1299_v1 }
 0x164   : > { %v649_v33 = vpop.trf.xlu1 }
 0x169   : > { %1160 = vmatmul.mubr.msk.bf16.gmra.mrb[12].mxu0 %vm654_vm4, %v648_v32 }
 0x16a   : > { %736 = vmatprep.mubr.bf16.mxu0 %v1299_v1 }
 0x171   : > { %1161 = vmatmul.mubr.msk.bf16.gmra.mrb[16].mxu0 %vm654_vm4, %v649_v33 }
 0x22c   : > { %v708_v34 = vpop.f32.mrb[4].mxu0 }
 0x22d   : > { %v710_v35 = vpop.f32.mrb[5].mxu0  ;;  %v1467_v45 = vadd.f32 %v708_v34, %v622_v38 }
 0x22e   : > { %v712_v36 = vpop.f32.mrb[6].mxu0  ;;  %v1477_v50 = vadd.f32 %v710_v35, %v623_v40 }
 0x22f   : > { %v714_v37 = vpop.f32.mrb[7].mxu0  ;;  %v1481_v53 = vadd.f32 %v712_v36, %v624_v42 }
 0x230   : > { %v1487_v57 = vadd.f32 %v714_v37, %v625_v46 }
 0x234   : > { %v718_v43 = vpop.f32.mrb[8].mxu0 }
 0x235   : > { %v1472_v47 = vadd.f32 %v718_v43, %v626_v39  ;;  %v720_v48 = vpop.f32.mrb[9].mxu0 }
 0x236   : > { %v1479_v51 = vadd.f32 %v720_v48, %v627_v41  ;;  %v722_v52 = vpop.f32.mrb[10].mxu0 }
 0x237   : > { %v747_v54 = vmax.f32 %v1467_v45, %v1472_v47  ;;  %v1485_v55 = vadd.f32 %v722_v52, %v628_v44  ;;  %v724_v56 = vpop.f32.mrb[11].mxu0 }
 0x238   : > { %v760_v58 = vmax.f32 %v1477_v50, %v1479_v51  ;;  %v1491_v59 = vadd.f32 %v724_v56, %v629_v49 }
 0x239   : > { %v748_v60 = vmax.f32 %v1481_v53, %v1485_v55 }
 0x23a   : > { %v761_v61 = vmax.f32 %v1487_v57, %v1491_v59 }
 0x23c   : > { %v728_v0 = vpop.f32.mrb[12].mxu0 }
 0x23d   : > { %v1506_v3 = vadd.f32 %v728_v0, %v630_v62  ;;  %v730_v6 = vpop.f32.mrb[13].mxu0 }
 0x23e   : > { %v1511_v8 = vadd.f32 %v730_v6, %v631_v63  ;;  %v732_v9 = vpop.f32.mrb[14].mxu0 }
 0x23f   : > { %v749_v10 = vmax.f32 %v747_v54, %v1506_v3  ;;  %v1514_v11 = vadd.f32 %v732_v9, %v632_v2  ;;  %v734_v12 = vpop.f32.mrb[15].mxu0 }
 0x240   : > { %v762_v13 = vmax.f32 %v760_v58, %v1511_v8  ;;  %v1517_v14 = vadd.f32 %v734_v12, %v633_v7 }
 0x241   : > { %v750_v15 = vmax.f32 %v748_v60, %v1514_v11 }
 0x242   : > { %v763_v16 = vmax.f32 %v761_v61, %v1517_v14 }
 0x244   : > { %v738_v20 = vpop.f32.mrb[16].mxu0 }
 0x245   : > { %v1530_v22 = vadd.f32 %v738_v20, %v634_v17  ;;  %v740_v23 = vpop.f32.mrb[17].mxu0 }
 0x246   : > { %v1535_v25 = vadd.f32 %v740_v23, %v635_v19  ;;  %v742_v26 = vpop.f32.mrb[18].mxu0 }
 0x247   : > { %v751_v27 = vmax.f32 %v749_v10, %v1530_v22  ;;  %v743_v28 = vadd.f32 %v742_v26, %v636_v21  ;;  %v744_v29 = vpop.f32.mrb[19].mxu0 }
 0x248   : > { %v764_v30 = vmax.f32 %v762_v13, %v1535_v25  ;;  %v745_v31 = vadd.f32 %v744_v29, %v637_v24 }
 0x249   : > { %v752_v32 = vmax.f32 %v750_v15, %v743_v28 }
 0x24a   : > { %v765_v33 = vmax.f32 %v763_v16, %v745_v31 }
 0x24b   : > { %v753_v34 = vmax.f32 %v751_v27, %v752_v32 }
 0x24c   : > { %v766_v35 = vmax.f32 %v764_v30, %v765_v33 }
 0x24d   : > { %v754_v36 = vrot.slane %v753_v34, 4 }
 0x24e   : > { %v767_v37 = vrot.slane %v766_v35, 4 }
 0x24f   : > { %v755_v38 = vmax.f32 %v753_v34, %v754_v36 }
 0x250   : > { %v768_v39 = vmax.f32 %v766_v35, %v767_v37 }
 0x251   : > { %v756_v40 = vrot.slane %v755_v38, 2 }
 0x252   : > { %v769_v41 = vrot.slane %v768_v39, 2 }
 0x253   : > { %v757_v42 = vmax.f32 %v755_v38, %v756_v40 }
 0x254   : > { %v770_v43 = vmax.f32 %v768_v39, %v769_v41 }
 0x255   : > { %v758_v44 = vrot.slane %v757_v42, 1 }
 0x256   : > { %v771_v46 = vrot.slane %v770_v43, 1 }
 0x257   : > { %v759_v48 = vmax.f32 %v757_v42, %v758_v44  ;;  %v830_v44 = vrot.slane %v1436_v18, 1 }
 0x258   : > { %v772_v49 = vmax.f32 %v770_v43, %v771_v46  ;;  %v891_v46 = vld [vmem:[%s489_s29] sm:$0xf] }
 0x259   : > { %v787_v52 = vsub.f32 %v743_v28, %v759_v48  ;;  %v773_v54 = vsub.f32 %v1467_v45, %v759_v48  ;;  %v775_v56 = vsub.f32 %v1481_v53, %v759_v48  ;;  %v777_v58 = vsub.f32 %v1472_v47, %v759_v48  ;;  %894 = vperm.xlu1 %1219, %v891_v46  }
 0x25a   : > { %v788_v60 = vsub.f32 %v745_v31, %v772_v49  ;;  %v774_v61 = vsub.f32 %v1477_v50, %v772_v49  ;;  %v776_v62 = vsub.f32 %v1487_v57, %v772_v49  ;;  %v778_v63 = vsub.f32 %v1479_v51, %v772_v49 }
 0x25b   : > { %v817_v0 = vmul.f32 1.442695, %v787_v52  ;;  %v780_v2 = vsub.f32 %v1491_v59, %v772_v49  ;;  %v779_v10 = vsub.f32 %v1485_v55, %v759_v48  ;;  %v789_v45 = vmul.f32 1.442695, %v773_v54 }
 0x25c   : > { %v819_v6 = vmul.f32 1.442695, %v788_v60  ;;  %v791_v7 = vmul.f32 1.442695, %v774_v61  ;;  %v795_v9 = vmul.f32 1.442695, %v776_v62  ;;  %v782_v12 = vsub.f32 %v1511_v8, %v772_v49 }
 0x25d   : > { %1221 = vpow2.f32 %v817_v0  ;;  %v793_v53 = vmul.f32 1.442695, %v775_v56  ;;  %v799_v47 = vmul.f32 1.442695, %v778_v63  ;;  %v784_v50 = vsub.f32 %v1517_v14, %v772_v49 }
 0x25e   : > { %1223 = vpow2.f32 %v819_v6  ;;  %v781_v51 = vsub.f32 %v1506_v3, %v759_v48  ;;  %v783_v57 = vsub.f32 %v1514_v11, %v759_v48  ;;  %v786_v59 = vsub.f32 %v1535_v25, %v772_v49 }
 0x25f   : > { %1225 = vpow2.f32 %v791_v7  ;;  %v803_v13 = vmul.f32 1.442695, %v780_v2  ;;  %v785_v55 = vsub.f32 %v1530_v22, %v759_v48  ;;  %v797_v15 = vmul.f32 1.442695, %v777_v58 }
 0x260   : > { %1227 = vpow2.f32 %v795_v9  ;;  %v801_v16 = vmul.f32 1.442695, %v779_v10  ;;  %v807_v17 = vmul.f32 1.442695, %v782_v12  ;;  %v811_v8 = vmul.f32 1.442695, %v784_v50 }
 0x261   : > { %1229 = vpow2.f32 %v789_v45  ;;  %v805_v14 = vmul.f32 1.442695, %v781_v51  ;;  %v809_v3 = vmul.f32 1.442695, %v783_v57  ;;  %v815_v11 = vmul.f32 1.442695, %v786_v59 }
 0x262   : > { %1231 = vpow2.f32 %v793_v53  ;;  %v813_v21 = vmul.f32 1.442695, %v785_v55  ;;  %v878_v49 = vlaneseq  ;;  %v888_v9 = vld [vmem:[%s485_s10] sm:$0x3] }
 0x263   : > { %1233 = vpow2.f32 %v799_v47 }
 0x264   : > { %1235 = vpow2.f32 %v803_v13  ;;  %v879_v58 = vshrl.u32 %v878_v49, 7 }
 0x265   : > { %1237 = vpow2.f32 %v797_v15 }
 0x266   : > { %1239 = vpow2.f32 %v801_v16  ;;  %v880_v60 = vsub.s32 2, %v879_v58 }
 0x267   : > { %v1222_v19 = vpop.eup %1221  ;;  %1241 = vpow2.f32 %v807_v17 }
 0x268   : > { %v1224_v20 = vpop.eup %1223  ;;  %1243 = vpow2.f32 %v811_v8 }
 0x269   : > { %v1226_v23 = vpop.eup %1225  ;;  %1245 = vpow2.f32 %v805_v14 }
 0x26a   : > { %v1228_v22 = vpop.eup %1227  ;;  %1247 = vpow2.f32 %v809_v3 }
 0x26b   : > { %v1230_v24 = vpop.eup %1229  ;;  %v822_v25 = vpack.c.bf16 %v1228_v22, %v1226_v23  ;;  %1249 = vpow2.f32 %v815_v11 }
 0x26c   : > { %v1232_v26 = vpop.eup %1231  ;;  %1251 = vpow2.f32 %v813_v21 }
 0x26d   : > { %v1234_v27 = vpop.eup %1233  ;;  %835 = vmatprep.subr.bf16.mxu1 %v822_v25  ;;  %v821_v28 = vpack.c.bf16 %v1232_v26, %v1230_v24 }
 0x26e   : > { %v1236_v29 = vpop.eup %1235 }
 0x26f   : > { %v1238_v30 = vpop.eup %1237  ;;  %836 = vmatpush1.bf16.msra.mxu1 %v821_v28  ;;  %v824_v31 = vpack.c.bf16 %v1236_v29, %v1234_v27 }
 0x270   : > { %v1240_v32 = vpop.eup %1239 }
 0x271   : > { %v1242_v33 = vpop.eup %1241  ;;  %837 = vmatprep.subr.bf16.mxu1 %v824_v31  ;;  %v823_v34 = vpack.c.bf16 %v1240_v32, %v1238_v30 }
 0x272   : > { %v1244_v35 = vpop.eup %1243 }
 0x273   : > { %v1246_v36 = vpop.eup %1245  ;;  %838 = vmatpush1.bf16.msra.mxu1 %v823_v34  ;;  %v826_v37 = vpack.c.bf16 %v1244_v35, %v1242_v33 }
 0x274   : > { %v1248_v38 = vpop.eup %1247 }
 0x275   : > { %v1250_v39 = vpop.eup %1249  ;;  %839 = vmatprep.subr.bf16.mxu1 %v826_v37  ;;  %v825_v40 = vpack.c.bf16 %v1248_v38, %v1246_v36 }
 0x276   : > { %v1252_v41 = vpop.eup %1251  ;;  %v828_v42 = vpack.c.bf16 %v1224_v20, %v1250_v39 }
 0x277   : > { %840 = vmatpush1.bf16.msra.mxu1 %v825_v40  ;;  %v827_v43 = vpack.c.bf16 %v1222_v19, %v1252_v41 }
 0x278   : > { %841 = vmatprep.subr.bf16.mxu1 %v828_v42 }
 0x27b   : > { %842 = vmatpush1.bf16.msra.mxu1 %v827_v43 }
 0x27e   : > { %1162 = vmatmul.mubr.msk.bf16.vlgmr.msra.gmra.mrb[4].mxu1 %vm831_vm5, %v830_v44 }
 0x27f   : > { %938 = vmatprep.mubr.bf16.mxu1 %v1299_v1 }
 0x2d8   : > { %v895_v10 = vpop.permute.xlu1 %894 }
 0x351   : > { %v869_v48 = vpop.f32.mrb[4].mxu1 }
 0x352   : > { %1253 = vrcp.f32 %v869_v48  ;;  %v871_v52 = vpop.f32.mrb[5].mxu1 }
 0x353   : > { %1255 = vrcp.f32 %v871_v52  ;;  %v873_v54 = vpop.f32.mrb[6].mxu1 }
 0x354   : > { %v874_v56 = vpop.f32.mrb[7].mxu1 }
 0x35c   : > { %v1254_v18 = vpop.eup %1253 }
 0x35d   : > { %v1256_v61 = vpop.eup %1255  ;;  %v881_v62 = vrot.slane %v1254_v18, %v880_v60 }
 0x35e   : > { %v885_v1 = vrot.slane %v1256_v61, %v880_v60 }
 0x35f   : > { %v886_v63 = vmul.f32 %v881_v62, %v869_v48 }
 0x360   : > { %v887_v0 = vmul.f32 %v885_v1, %v871_v52 }
 0x361   : > { %v889_v2 = vpack.c.bf16 %v886_v63, %v886_v63 }
 0x362   : > { %v890_v6 = vpack.c.bf16 %v887_v0, %v887_v0 }
 0x363   : > { %v901_v7 = vsel %vm667_vm3, %v889_v2, 0 }
 0x364   : > { %1163 = vmatprep.subr.msk.bf16.mxu1 %vm667_vm3, %v890_v6 }
 0x365   : > { %907 = vmatpush1.bf16.msra.mxu1 %v901_v7 }
 0x368   : > { %1164 = vmatmul.mubr.msk.bf16.vlgmr.msra.gmra.mrb[8].mxu1 %vm654_vm4, %v888_v9 }
 0x43b   : > { %v940_v45 = vpop.f32.mrb[8].mxu1 }
 0x43c   : > { %v942_v53 = vpop.f32.mrb[9].mxu1  ;;  %v941_v47 = vadd.f32 %v940_v45, %v895_v10 }
 0x43d   : > { %v944_v12 = vpop.f32.mrb[10].mxu1  ;;  %v943_v50 = vadd.f32 %v942_v53, %v895_v10 }
 0x43e   : > { %v947_v51 = vadd.f32 %v941_v47, %v1408_v4  ;;  %v945_v57 = vpop.f32.mrb[11].mxu1 }
 0x43f   : > { %v948_v59 = vadd.f32 %v943_v50, %v1413_v5 }
 0x441   : > { %v951_v13 = vcombine.low %v947_v51, %v948_v59 }
 0x443   : > { %953 = vst [vmem:[%s498_s18] sm:$0xff] %v951_v13 }
 0x444 PF: > { %s19_s13 = sadd.s32 1, %s1295_s13   ;;  %s1598_s30 = smov %s1287_s11 }
 0x445   : > { %p16_p7 = scmp.ge.s32.totalorder %s19_s13, 6   ;;  %s1599_s10 = smov %s1291_s12 }
 0x446   : > { %s1600_s11 = smov %s1603_s14  ;;  %s1601_s12 = smov %s1607_s15 }
 0x447   :  { %18 = sbr.rel (!%p16_p7) target bundleno = 3 (0x3), region = 107 }

</bundles_post_ra>
